<compile_context>
chip_gen: v6e
topology: v6e:2x2x1
jax: 0.10.0
libtpu: 0.0.40
codegen_flags: <defaults>
</compile_context>

<pallas_src>
import functools

import jax
import jax.numpy as jnp
from jax.experimental import pallas as pl
from jax.experimental.pallas import tpu as pltpu

_NEG_BIG = -1.0e30  # finite "-inf": exp() underflows to 0 and 0*(-1e30)=0 (no NaN)


def _round_up(n, m):
    return ((n + m - 1) // m) * m


def _fused_kernel(x_ref, w_ref, b_ref, tgt_ref, logits_ref, nll_ref, acc_ref):
    """One (batch-tile i, K-tile k) grid step of fused linear + cross-entropy."""
    # All grid queries at kernel top level (never inside pl.when closures).
    k = pl.program_id(1)
    k_last = pl.num_programs(1) - 1

    # ---- matmul accumulation over the K (feature) reduction axis -----------
    @pl.when(k == 0)
    def _init():
        acc_ref[...] = jnp.zeros_like(acc_ref)

    acc_ref[...] += jnp.dot(x_ref[...], w_ref[...],
                            preferred_element_type=jnp.float32)

    # ---- epilogue: bias + log-softmax + NLL, only on the last K step -------
    @pl.when(k == k_last)
    def _epilogue():
        logits = acc_ref[...] + b_ref[...]            # [tm, Cp]; padded cols ~ -1e30
        m = jnp.max(logits, axis=-1, keepdims=True)
        shifted = logits - m
        lse = jnp.log(jnp.sum(jnp.exp(shifted), axis=-1, keepdims=True))

        # one-hot gather of the target column (targets are always < C, so the
        # padded columns are never selected; shifted*onehot is finite*0 there).
        cls = jax.lax.broadcasted_iota(jnp.int32, logits.shape, 1)
        onehot = (cls == tgt_ref[...]).astype(jnp.float32)
        tgt_shifted = jnp.sum(shifted * onehot, axis=-1, keepdims=True)
        nll = lse - tgt_shifted                        # [tm, 1]

        logits_ref[...] = logits
        nll_ref[...] = nll                             # padded rows sliced off outside


def fused_linear_xent(x, w, b, targets, *, tm=256, tk=512):
    """Fused  y = x @ W + b  and  CrossEntropyLoss(y, targets)  on TPU.

    Returns (logits [B, C] f32, mean_loss scalar, sum_loss scalar).
    Note: on v5e prefer tm/tk that are 128-multiples; on v6e/v7x 256-multiples.
    """
    B, D = x.shape
    Dw, C = w.shape
    assert D == Dw and b.shape == (C,) and targets.shape == (B,)

    # ---- pad to TPU-friendly (lane-dense) shapes ----------------------------
    Cp = _round_up(C, 128)                    # lane-dense classes (MXU N, vst)
    tm = min(tm, _round_up(B, 8))             # batch tile, multiple of 8 sublanes
    Bp = _round_up(B, tm)
    tk = min(tk, _round_up(D, 128))           # K tile, multiple of 128 lanes
    Dp = _round_up(D, tk)

    xp = jnp.zeros((Bp, Dp), jnp.float32).at[:B, :D].set(x).astype(jnp.bfloat16)
    wp = jnp.zeros((Dp, Cp), jnp.float32).at[:D, :C].set(w).astype(jnp.bfloat16)
    bp = jnp.full((1, Cp), _NEG_BIG, jnp.float32).at[0, :C].set(b)
    tp = jnp.zeros((Bp, 1), jnp.int32).at[:B, 0].set(targets.astype(jnp.int32))

    grid = (Bp // tm, Dp // tk)               # (batch tiles, K tiles); K last

    cost = pl.CostEstimate(
        flops=2 * Bp * Dp * Cp,
        transcendentals=Bp * Cp + Bp,                       # exp + log
        bytes_accessed=(Bp * Dp * 2 + Dp * Cp * 2 + Cp * 4
                        + Bp * 4 + Bp * Cp * 4 + Bp * 4),
    )

    logits_p, nll = pl.pallas_call(
        _fused_kernel,
        out_shape=(
            jax.ShapeDtypeStruct((Bp, Cp), jnp.float32),    # padded logits
            jax.ShapeDtypeStruct((Bp, 1), jnp.float32),     # per-row NLL
        ),
        grid_spec=pltpu.PrefetchScalarGridSpec(
            num_scalar_prefetch=0,
            grid=grid,
            in_specs=[
                pl.BlockSpec((tm, tk), lambda i, k: (i, k)),     # x
                pl.BlockSpec((tk, Cp), lambda i, k: (k, 0)),     # w
                pl.BlockSpec((1, Cp), lambda i, k: (0, 0)),      # bias
                pl.BlockSpec((tm, 1), lambda i, k: (i, 0)),      # targets
            ],
            out_specs=[
                pl.BlockSpec((tm, Cp), lambda i, k: (i, 0)),     # logits
                pl.BlockSpec((tm, 1), lambda i, k: (i, 0)),      # nll
            ],
            scratch_shapes=[pltpu.VMEM((tm, Cp), jnp.float32)],  # f32 accumulator
        ),
        compiler_params=pltpu.CompilerParams(
            dimension_semantics=("parallel", "arbitrary")),      # megacore batch
        cost_estimate=cost,
    )(xp, wp, bp, tp)

    sum_loss = jnp.sum(nll[:B])               # drop batch-padding rows here
    mean_loss = sum_loss / jnp.float32(B)
    return logits_p[:B, :C], mean_loss, sum_loss


def base_model_step(x, w, b, targets):
    """Forward + criterion (as BaseModel.update_step computes before backward()).

    scaled_loss follows update_step's `loss.item() * target.shape[0]`.
    """
    y_pred, mean_loss, scaled_loss = fused_linear_xent(x, w, b, targets)
    return y_pred, mean_loss, scaled_loss


if __name__ == "__main__":
    key = jax.random.PRNGKey(0)
    B, D, C = 8, 32, 16                       # batch, hidden, num classes

    kx, kw, kb, kt = jax.random.split(key, 4)
    x = jax.random.normal(kx, (B, D), dtype=jnp.float32)
    w = jax.random.normal(kw, (D, C), dtype=jnp.float32) * 0.1
    b = jax.random.normal(kb, (C,), dtype=jnp.float32) * 0.01
    targets = jax.random.randint(kt, (B,), 0, C, dtype=jnp.int32)

    y_pred, mean_loss, scaled_loss = base_model_step(x, w, b, targets)
    jax.block_until_ready((y_pred, mean_loss, scaled_loss))

    # pure-JAX reference (same bf16-operand / f32-accumulate matmul)
    ref_logits = jnp.dot(x.astype(jnp.bfloat16), w.astype(jnp.bfloat16),
                         preferred_element_type=jnp.float32) + b
    ref_logp = jax.nn.log_softmax(ref_logits, axis=-1)
    ref_mean = -jnp.mean(ref_logp[jnp.arange(B), targets])

    assert y_pred.shape == (B, C)
    assert jnp.allclose(y_pred, ref_logits, atol=2e-3, rtol=2e-3)
    assert jnp.allclose(mean_loss, ref_mean, atol=2e-3, rtol=2e-3)
    assert jnp.allclose(scaled_loss, ref_mean * B, atol=2e-2, rtol=2e-3)

    print("KERNEL_OK")
</pallas_src>

<mosaic_0001>
module attributes {stable_mosaic.version = 11 : i64} {
  func.func @_fused_kernel(%arg0: i32, %arg1: i32, %arg2: memref<8x128xbf16, #tpu.memory_space<vmem>>, %arg3: memref<128x128xbf16, #tpu.memory_space<vmem>>, %arg4: memref<1x128xf32, #tpu.memory_space<vmem>>, %arg5: memref<8x1xi32, #tpu.memory_space<vmem>>, %arg6: memref<8x128xf32, #tpu.memory_space<vmem>>, %arg7: memref<8x1xf32, #tpu.memory_space<vmem>>, %arg8: memref<8x128xf32, #tpu.memory_space<vmem>>) attributes {dimension_semantics = [#tpu.dimension_semantics<parallel>, #tpu.dimension_semantics<arbitrary>], iteration_bounds = array<i64: 1, 1>, scalar_prefetch = 0 : i64, scratch_operands = 1 : i64, tpu.core_type = #tpu.core_type<tc>, window_params = [{transform_indices = @transform_0, window_bounds = array<i64: 8, 128>}, {transform_indices = @transform_1, window_bounds = array<i64: 128, 128>}, {pipeline_mode = #tpu.pipeline_mode<synchronous>, transform_indices = @transform_2, window_bounds = array<i64: 1, 128>}, {transform_indices = @transform_3, window_bounds = array<i64: 8, 1>}, {transform_indices = @transform_4, window_bounds = array<i64: 8, 128>}, {transform_indices = @transform_5, window_bounds = array<i64: 8, 1>}]} {
    %c0_i32 = arith.constant 0 : i32
    %0 = arith.cmpi eq, %arg1, %c0_i32 : i32
    %1 = arith.extui %0 : i1 to i32
    %c0_i32_0 = arith.constant 0 : i32
    %2 = arith.cmpi ne, %1, %c0_i32_0 : i32
    scf.if %2 {
      %cst_10 = arith.constant 0.000000e+00 : f32
      %12 = vector.broadcast %cst_10 : f32 to vector<8x128xf32>
      %c0_11 = arith.constant 0 : index
      %c0_12 = arith.constant 0 : index
      %13 = vector.load %arg8[%c0_11, %c0_12] : memref<8x128xf32, #tpu.memory_space<vmem>>, vector<8x128xf32>
      tpu.vector_store %arg8[%c0_11, %c0_12], %12 {strides = array<i32>} : memref<8x128xf32, #tpu.memory_space<vmem>>, vector<8x128xf32>,
    } else {
    }
    %c0 = arith.constant 0 : index
    %c0_1 = arith.constant 0 : index
    %3 = vector.load %arg8[%c0, %c0_1] : memref<8x128xf32, #tpu.memory_space<vmem>>, vector<8x128xf32>
    %c0_2 = arith.constant 0 : index
    %c0_3 = arith.constant 0 : index
    %4 = vector.load %arg2[%c0_2, %c0_3] : memref<8x128xbf16, #tpu.memory_space<vmem>>, vector<8x128xbf16>
    %c0_4 = arith.constant 0 : index
    %c0_5 = arith.constant 0 : index
    %5 = vector.load %arg3[%c0_4, %c0_5] : memref<128x128xbf16, #tpu.memory_space<vmem>>, vector<128x128xbf16>
    %cst = arith.constant dense<0.000000e+00> : vector<8x128xf32>
    %6 = tpu.matmul %4, %5, %cst {dimension_numbers = #tpu.dot_dimension_numbers<[1], [0], [0], [1], [0, 0, 1, 1], [], []>} : vector<8x128xbf16>, vector<128x128xbf16>, vector<8x128xf32> -> vector<8x128xf32>
    %7 = arith.addf %3, %6 : vector<8x128xf32>
    %c0_6 = arith.constant 0 : index
    %c0_7 = arith.constant 0 : index
    %8 = vector.load %arg8[%c0_6, %c0_7] : memref<8x128xf32, #tpu.memory_space<vmem>>, vector<8x128xf32>
    tpu.vector_store %arg8[%c0_6, %c0_7], %7 {strides = array<i32>} : memref<8x128xf32, #tpu.memory_space<vmem>>, vector<8x128xf32>,
    %c0_i32_8 = arith.constant 0 : i32
    %9 = arith.cmpi eq, %arg1, %c0_i32_8 : i32
    %10 = arith.extui %9 : i1 to i32
    %c0_i32_9 = arith.constant 0 : i32
    %11 = arith.cmpi ne, %10, %c0_i32_9 : i32
    scf.if %11 {
      %c0_10 = arith.constant 0 : index
      %c0_11 = arith.constant 0 : index
      %12 = vector.load %arg8[%c0_10, %c0_11] : memref<8x128xf32, #tpu.memory_space<vmem>>, vector<8x128xf32>
      %c0_12 = arith.constant 0 : index
      %c0_13 = arith.constant 0 : index
      %13 = vector.load %arg4[%c0_12, %c0_13] : memref<1x128xf32, #tpu.memory_space<vmem>>, vector<1x128xf32>
      %14 = vector.broadcast %13 : vector<1x128xf32> to vector<8x128xf32>
      %15 = arith.addf %12, %14 : vector<8x128xf32>
      %cst_14 = arith.constant dense<0xFF800000> : vector<8xf32>
      %16 = vector.multi_reduction <maximumf>, %15, %cst_14 [1] : vector<8x128xf32> to vector<8xf32>
      %17 = vector.shape_cast %16 : vector<8xf32> to vector<8x1xf32>
      %18 = vector.broadcast %17 : vector<8x1xf32> to vector<8x128xf32>
      %19 = arith.subf %15, %18 : vector<8x128xf32>
      %20 = math.exp %19 : vector<8x128xf32>
      %cst_15 = arith.constant dense<0.000000e+00> : vector<8xf32>
      %21 = vector.multi_reduction <add>, %20, %cst_15 [1] : vector<8x128xf32> to vector<8xf32>
      %22 = vector.shape_cast %21 : vector<8xf32> to vector<8x1xf32>
      %23 = math.log %22 : vector<8x1xf32>
      %24 = tpu.iota {dimensions = array<i32: 1>} : vector<8x128xi32>
      %c0_16 = arith.constant 0 : index
      %c0_17 = arith.constant 0 : index
      %25 = vector.load %arg5[%c0_16, %c0_17] : memref<8x1xi32, #tpu.memory_space<vmem>>, vector<8x1xi32>
      %26 = vector.broadcast %25 : vector<8x1xi32> to vector<8x128xi32>
      %27 = arith.cmpi eq, %24, %26 : vector<8x128xi32>
      %28 = arith.extui %27 : vector<8x128xi1> to vector<8x128xi32>
      %29 = arith.sitofp %28 : vector<8x128xi32> to vector<8x128xf32>
      %30 = arith.mulf %19, %29 : vector<8x128xf32>
      %cst_18 = arith.constant dense<0.000000e+00> : vector<8xf32>
      %31 = vector.multi_reduction <add>, %30, %cst_18 [1] : vector<8x128xf32> to vector<8xf32>
      %32 = vector.shape_cast %31 : vector<8xf32> to vector<8x1xf32>
      %33 = arith.subf %23, %32 : vector<8x1xf32>
      %c0_19 = arith.constant 0 : index
      %c0_20 = arith.constant 0 : index
      %34 = vector.load %arg6[%c0_19, %c0_20] : memref<8x128xf32, #tpu.memory_space<vmem>>, vector<8x128xf32>
      tpu.vector_store %arg6[%c0_19, %c0_20], %15 {strides = array<i32>} : memref<8x128xf32, #tpu.memory_space<vmem>>, vector<8x128xf32>,
      %c0_21 = arith.constant 0 : index
      %c0_22 = arith.constant 0 : index
      %35 = vector.load %arg7[%c0_21, %c0_22] : memref<8x1xf32, #tpu.memory_space<vmem>>, vector<8x1xf32>
      tpu.vector_store %arg7[%c0_21, %c0_22], %33 {strides = array<i32>} : memref<8x1xf32, #tpu.memory_space<vmem>>, vector<8x1xf32>,
    } else {
    }
    return
  }
  func.func @transform_0(%arg0: i32, %arg1: i32) -> (i32, i32) {
    %c0_i32 = arith.constant 0 : i32
    return %arg0, %arg1 : i32, i32
  }
  func.func @transform_1(%arg0: i32, %arg1: i32) -> (i32, i32) {
    %c0_i32 = arith.constant 0 : i32
    %c0_i32_0 = arith.constant 0 : i32
    return %arg1, %c0_i32 : i32, i32
  }
  func.func @transform_2(%arg0: i32, %arg1: i32) -> (i32, i32) {
    %c0_i32 = arith.constant 0 : i32
    %c0_i32_0 = arith.constant 0 : i32
    %c0_i32_1 = arith.constant 0 : i32
    return %c0_i32, %c0_i32_0 : i32, i32
  }
  func.func @transform_3(%arg0: i32, %arg1: i32) -> (i32, i32) {
    %c0_i32 = arith.constant 0 : i32
    %c0_i32_0 = arith.constant 0 : i32
    return %arg0, %c0_i32 : i32, i32
  }
  func.func @transform_4(%arg0: i32, %arg1: i32) -> (i32, i32) {
    %c0_i32 = arith.constant 0 : i32
    %c0_i32_0 = arith.constant 0 : i32
    return %arg0, %c0_i32 : i32, i32
  }
  func.func @transform_5(%arg0: i32, %arg1: i32) -> (i32, i32) {
    %c0_i32 = arith.constant 0 : i32
    %c0_i32_0 = arith.constant 0 : i32
    return %arg0, %c0_i32 : i32, i32
  }
}

</mosaic_0001>

<bundles_post_ra>
// kernel: tpu_custom_call.1
= control target key start
LH: loop header
LB: loop body
LE: loop exit
PB: predicated region body
PF: predicated region fallthrough
CT: control target
= control target key end

     0   :  { %11 = vsyncpa [#allocation4], 0  ;;  %s362_s0 = inlined_call_operand.vmem [shape: bf16[8,128], index: 0, kind: input, shape index: {}]   ;;  %s363_s1 = inlined_call_operand.hbm [shape: bf16[128,128], index: 1, kind: input, shape index: {}]   ;;  %s364_s2 = inlined_call_operand.vmem [shape: f32[1,128], index: 2, kind: input, shape index: {}]   ;;  %s365_s3 = inlined_call_operand.vmem [shape: s32[8,1], index: 3, kind: input, shape index: {}]   ;;  %s366_s4 = inlined_call_operand.hbm [shape: f32[8,128], index: 4, kind: output, shape index: {0}]   ;;  %s367_s5 = inlined_call_operand.vmem [shape: f32[8,1], index: 5, kind: output, shape index: {1}]  }
   0x1   :  { %12 = vsyncpa [#allocation5], 0  ;;  %s307_s18 = smov [#allocation3]  }
   0x2   :  { %s20_s19 = sshll.u32 %s307_s18, 4  ;;  %s21_s19 = int_to_ptr.vmem [resolvable:$true] %s20_s19 }
   0x3   :  { %s271_s20 = scalar_lea.vmem %s21_s19, 1024  ;;  %p276_p1 = scmp.lt.s32.totalorder %s21_s19, %s21_s19 }
   0x4   :  { %p272_p0 = scmp.ne.s32.totalorder %s21_s19, %s271_s20  ;;  %p277_p2 = scmp.lt.s32.totalorder %s271_s20, %s271_s20 }
   0x6   :  { %p278_p3 = por %p277_p2, %p276_p1 }
   0x8   :  { %p279_p4 = pnand %p278_p3, %p272_p0 }
   0xa   :  { %282 = shalt.err (!%p279_p4)
}
   0xb   :  { %s308_s21 = smov 64   ;;  %s309_s22 = smov 4  }
   0xc   :  { %26 = dma.hbm_to_vmem [thread:$0]  %s363_s1, 1024, %s21_s19, [#allocation4], %s308_s21, %s308_s21, %s309_s22  }
   0xd   :  { %303 = dma.done.wait [#allocation4], 1024  }
   0xe   :  { %304 = vsyncadd [#allocation4], 4294966272  ;;  %v310_v0 = vmov 0.0   ;;  %vm311_vm0 = vmmov 0   ;;  %v251_v1 = vld [vmem:[#allocation3 + $0x38] sm:$0xff]   ;;  %v252_v2 = vld [vmem:[#allocation3 + $0x30] sm:$0xff]   ;;  %v169_v21 = vlaneseq }
   0xf   :  { %223 = vmatprep.subr.bf16.mxu0 %v310_v0  ;;  %239 = vmatprep.mubr.msk.bf16.mxu0 %vm311_vm0, %v310_v0  ;;  %v253_v3 = vld [vmem:[#allocation3 + $0x28] sm:$0xff]   ;;  %v254_v4 = vld [vmem:[#allocation3 + $0x20] sm:$0xff]   ;;  %v255_v5 = vld [vmem:[#allocation3 + $0x18] sm:$0xff]   ;;  %v312_v10 = vmov 0  }
  0x10   :  { %224 = vmatpush3.bf16.msra.mxu0 %v251_v1  ;;  %v256_v6 = vld [vmem:[#allocation3 + $0x10] sm:$0xff]   ;;  %v257_v7 = vld [vmem:[#allocation3 + $0x8] sm:$0xff]   ;;  %v258_v8 = vld [vmem:[#allocation3] sm:$0xff]   ;;  %250 = vset.pattern.permute.xlu0 %v312_v10  ;;  %v170_v22 = vand.u32 127, %v169_v21 }
  0x11   :  { %225 = vmatprep.subr.bf16.mxu0 %v310_v0  ;;  %v41_v9 = vld [vmem:[%s362_s0] sm:$0xf]  ;;  %s313_s0 = smov [#allocation6]  }
  0x12   :  { %v212_v11 = vld [vmem:[%s364_s2] ss:$0 sm:$0xff]  ;;  %s191_s2 = sshll.u32 %s313_s0, 4  ;;  %s192_s2 = int_to_ptr.vmem [resolvable:$true] %s191_s2 }
  0x13   :  { %v171_v17 = vld [vmem:[%s365_s3] sm:$0xff]  ;;  %s283_s30 = scalar_lea.vmem %s192_s2, 128  ;;  %p288_p6 = scmp.lt.s32.totalorder %s192_s2, %s192_s2 }
  0x14   :  { %226 = vmatpush3.bf16.msra.mxu0 %v252_v2  ;;  %p284_p5 = scmp.ne.s32.totalorder %s192_s2, %s283_s30  ;;  %p289_p7 = scmp.lt.s32.totalorder %s283_s30, %s283_s30 }
  0x15   :  { %227 = vmatprep.subr.bf16.mxu0 %v310_v0 }
  0x16   :  { %p290_p8 = por %p289_p7, %p288_p6 }
  0x18   :  { %228 = vmatpush3.bf16.msra.mxu0 %v253_v3  ;;  %p291_p9 = pnand %p290_p8, %p284_p5 }
  0x19   :  { %229 = vmatprep.subr.bf16.mxu0 %v310_v0 }
  0x1c   :  { %230 = vmatpush3.bf16.msra.mxu0 %v254_v4 }
  0x1d   :  { %231 = vmatprep.subr.bf16.mxu0 %v310_v0 }
  0x20   :  { %232 = vmatpush3.bf16.msra.mxu0 %v255_v5 }
  0x21   :  { %233 = vmatprep.subr.bf16.mxu0 %v310_v0 }
  0x24   :  { %234 = vmatpush3.bf16.msra.mxu0 %v256_v6 }
  0x25   :  { %235 = vmatprep.subr.bf16.mxu0 %v310_v0 }
  0x28   :  { %236 = vmatpush3.bf16.msra.mxu0 %v257_v7 }
  0x29   :  { %237 = vmatprep.subr.bf16.mxu0 %v310_v0 }
  0x2c   :  { %238 = vmatpush3.bf16.msra.mxu0 %v258_v8 }
  0x2f   :  { %240 = vmatmul.mubr.bf16.vlgmr.msra.gmra.mxu0 %v41_v9 }
  0xef   :  { %v140_v12 = vpop.f32.mrf.mxu0 }
  0xf0   :  { %v159_v13 = vadd.f32 %v212_v11, %v140_v12 }
  0xf1   :  { %v241_v14 = vpop.f32.mrf.mxu0 }
  0xf2   :  { %182 = vst [vmem:[#allocation6] sm:$0xff] %v159_v13  ;;  %160 = vmax.xlane.f32.xlu0 %v159_v13 }
  0xf3   :  { %v143_v15 = vpop.f32.mrf.mxu0 }
  0xf5   :  { %v242_v16 = vpop.f32.mrf.mxu0 }
 0x108   :  { %173 = vperm.xlu0 %250, %v171_v17  }
 0x17b   :  { %v161_v18 = vpop.xlane.xlu0 %160 }
 0x17c   :  { %v162_v19 = vsub.f32 %v159_v13, %v161_v18 }
 0x17e   :  { %v163_v20 = vmul.f32 1.442695, %v162_v19 }
 0x180   :  { %259 = vpow2.f32 %v163_v20 }
 0x183   :  { %v174_v23 = vpop.permute.xlu0 %173 }
 0x184   :  { %vm175_vm1 = vcmp.eq.s32.totalorder %v170_v22, %v174_v23 }
 0x185   :  { %v213_v25 = vsel %vm175_vm1, 1.0, %v310_v0 }
 0x186   :  { %v178_v26 = vmul.f32 %v213_v25, %v162_v19 }
 0x18d   :  { %v260_v24 = vpop.eup %259 }
 0x18e   :  { %165 = vadd.xlane.f32.xlu1 %v260_v24 }
 0x192   :  { %179 = vadd.xlane.f32.xlu1 %v178_v26 }
 0x193   :  { %294 = shalt.err (!%p291_p9)
}
 0x194   :  { %194 = dma.vmem_to_hbm [thread:$0]  %s192_s2, 128, %s366_s4, [#allocation5]   ;;  %vm183_vm2 = vcmask 7168  }
 0x217   :  { %v166_v27 = vpop.xlane.xlu1 %165 }
 0x218   :  { %261 = vlog2.f32 %v166_v27 }
 0x21b   :  { %v180_v30 = vpop.xlane.xlu1 %179 }
 0x225   :  { %v262_v28 = vpop.eup %261 }
 0x226   :  { %v168_v29 = vmul.f32 0.6931472, %v262_v28 }
 0x228   :  { %v181_v31 = vsub.f32 %v168_v29, %v180_v30 }
 0x22a   :  { %184 = vst.msk [vmem:[%s367_s5] sm:$0xff] %vm183_vm2, %v181_v31 }
 0x22b   :  { %305 = dma.done.wait [#allocation5], 128  }
 0x22c   :  { %306 = vsyncadd [#allocation5], 4294967168 }
 0x22d   :  { %202 = vsyncpa [#allocation4], 1 }
 0x22e   :  { %203 = vsyncpa [#allocation5], 1 }

</bundles_post_ra>
